<compile_context>
chip_gen: v5e
topology: v5e:2x2
jax: 0.10.0
libtpu: 0.0.40
codegen_flags: <defaults>
</compile_context>

<pallas_src>
import math
import functools

import jax
import jax.numpy as jnp
from jax.experimental import pallas as pl
from jax.experimental.pallas import tpu as pltpu


def _critic_kernel(s_ref, a_ref, w1s_ref, w1a_ref, b1_ref, w2_ref, b2_ref,
                   w3_ref, b3_ref, q_ref):
    cdt = w1s_ref.dtype                       # MXU-input dtype (f32 or bf16)
    s = s_ref[...].astype(cdt)
    a = a_ref[...].astype(cdt)

    # fc1 on the split weight: identical to cat([s, a], dim=1) @ W1 + b1.
    h1 = (jnp.dot(s, w1s_ref[...], preferred_element_type=jnp.float32)
          + jnp.dot(a, w1a_ref[...], preferred_element_type=jnp.float32)
          + b1_ref[...])
    h1 = jnp.maximum(h1, 0.0)                 # ReLU (f32 on the VPU)

    h2 = jnp.dot(h1.astype(cdt), w2_ref[...],
                 preferred_element_type=jnp.float32) + b2_ref[...]
    h2 = jnp.maximum(h2, 0.0)                 # ReLU

    # q_val layer (fan_out == 1): VPU multiply + lane (XLU) reduction instead of an
    # N=1 MXU matmul, plus a scalar bias read from SMEM.
    w3_row = w3_ref[...].astype(jnp.float32)  # (1, H2)
    q = jnp.sum(h2 * w3_row, axis=-1, keepdims=True) + b3_ref[0, 0]
    q_ref[...] = q.astype(q_ref.dtype)


def critic_forward(state, action, params, *, block_b=512):
    """state: [B, state_dim], action: [B, action_dim]  ->  q: [B, 1] (float32)."""
    w1s, w1a, b1, w2, b2, w3, b3 = params
    state = state.astype(jnp.float32)
    action = action.astype(jnp.float32)
    B, state_dim = state.shape
    action_dim = action.shape[1]
    h1 = w1s.shape[1]
    h2 = w2.shape[1]

    # Batch tile: large enough to amortize ~0.35 us/grid-step pipeline overhead, small
    # enough that double-buffered activation blocks stay far under v7x's 64 MiB VMEM
    # (and the 32 MiB default scoped limit).  Must be a multiple of 8 unless it covers
    # the whole batch (block_b=512 satisfies this).
    tb = B if B <= block_b else block_b
    grid = (pl.cdiv(B, tb),)

    # Weights/biases: full-array blocks with constant index maps -> DMA'd once and
    # kept resident in VMEM across all grid steps (~70 KiB total at H=128).
    resident = lambda shape: pl.BlockSpec(shape, lambda i: (0, 0))

    return pl.pallas_call(
        _critic_kernel,
        out_shape=jax.ShapeDtypeStruct((B, 1), jnp.float32),
        grid=grid,
        in_specs=[
            pl.BlockSpec((tb, state_dim), lambda i: (i, 0)),   # state tile
            pl.BlockSpec((tb, action_dim), lambda i: (i, 0)),  # action tile
            resident((state_dim, h1)),                         # W1 (state rows)
            resident((action_dim, h1)),                        # W1 (action rows)
            resident((1, h1)),                                 # b1
            resident((h1, h2)),                                # W2
            resident((1, h2)),                                 # b2
            resident((1, h2)),                                 # W3 as a row
            pl.BlockSpec(memory_space=pltpu.MemorySpace.SMEM), # b3 scalar (1,1)
        ],
        out_specs=pl.BlockSpec((tb, 1), lambda i: (i, 0)),
        compiler_params=pltpu.CompilerParams(
            dimension_semantics=("parallel",)),  # batch axis -> both v7x TensorCores
    )(state, action, w1s, w1a, b1, w2, b2, w3, b3)


def init_critic_params(key, state_dim, action_dim, hidden1=128, hidden2=128,
                       weight_dtype=jnp.float32):
    """nn.Linear-style init (U[-1/sqrt(fan_in), +1/sqrt(fan_in)]).

    Weights are stored [fan_in, fan_out] (transposed from PyTorch) so the kernel does
    x @ W; W1 is split into its state/action row blocks; W3 is kept as a (1, hidden2)
    row for the VPU reduction.  Biases stay f32 (bias/ReLU math is f32 on the VPU).
    """
    def linear(k, fan_in, fan_out):
        kw, kb = jax.random.split(k)
        bound = 1.0 / math.sqrt(fan_in)
        w = jax.random.uniform(kw, (fan_in, fan_out), jnp.float32, -bound, bound)
        b = jax.random.uniform(kb, (1, fan_out), jnp.float32, -bound, bound)
        return w, b

    k1, k2, k3 = jax.random.split(key, 3)
    w1, b1 = linear(k1, state_dim + action_dim, hidden1)
    w2, b2 = linear(k2, hidden1, hidden2)
    w3, b3 = linear(k3, hidden2, 1)                    # w3: (hidden2, 1), b3: (1, 1)

    w1s = w1[:state_dim].astype(weight_dtype)
    w1a = w1[state_dim:].astype(weight_dtype)
    w2 = w2.astype(weight_dtype)
    w3_row = w3.T.astype(weight_dtype)                 # (1, hidden2)
    return (w1s, w1a, b1, w2, b2, w3_row, b3)


if __name__ == "__main__":
    key = jax.random.PRNGKey(0)
    k_s, k_a, k_p = jax.random.split(key, 3)

    batch, state_dim, action_dim = 8, 8, 4
    state = jax.random.normal(k_s, (batch, state_dim), jnp.float32)
    action = jax.random.normal(k_a, (batch, action_dim), jnp.float32)
    params = init_critic_params(k_p, state_dim, action_dim)

    # In a real RL loop this jit would wrap the whole step (actor + critic + loss) so
    # the pallas_call launch overhead is amortized; here we jit just the forward.
    fwd = jax.jit(functools.partial(critic_forward, block_b=512))
    q = fwd(state, action, params)
    jax.block_until_ready(q)

    # Pure-JAX reference of the same forward pass (cat -> fc1 -> ReLU -> fc2 -> ReLU -> q_val).
    w1s, w1a, b1, w2, b2, w3, b3 = params
    x = jnp.concatenate([state, action], axis=1)
    w1 = jnp.concatenate([w1s, w1a], axis=0).astype(jnp.float32)
    h1_ref = jnp.maximum(x @ w1 + b1, 0.0)
    h2_ref = jnp.maximum(h1_ref @ w2.astype(jnp.float32) + b2, 0.0)
    q_ref = h2_ref @ w3.astype(jnp.float32).T + b3

    assert q.shape == (batch, 1)
    assert jnp.allclose(q, q_ref, atol=1e-5, rtol=1e-5)

    print("KERNEL_OK")
</pallas_src>

<mosaic_0001>
module attributes {stable_mosaic.version = 11 : i64} {
  func.func @_critic_kernel(%arg0: i32, %arg1: memref<8x8xf32, #tpu.memory_space<vmem>>, %arg2: memref<8x4xf32, #tpu.memory_space<vmem>>, %arg3: memref<8x128xf32, #tpu.memory_space<vmem>>, %arg4: memref<4x128xf32, #tpu.memory_space<vmem>>, %arg5: memref<1x128xf32, #tpu.memory_space<vmem>>, %arg6: memref<128x128xf32, #tpu.memory_space<vmem>>, %arg7: memref<1x128xf32, #tpu.memory_space<vmem>>, %arg8: memref<1x128xf32, #tpu.memory_space<vmem>>, %arg9: memref<1x1xf32, #tpu.memory_space<smem>>, %arg10: memref<8x1xf32, #tpu.memory_space<vmem>>) attributes {dimension_semantics = [#tpu.dimension_semantics<parallel>], iteration_bounds = array<i64: 1>, scalar_prefetch = 0 : i64, scratch_operands = 0 : i64, tpu.core_type = #tpu.core_type<tc>, window_params = [{transform_indices = @transform_0, window_bounds = array<i64: 8, 8>}, {transform_indices = @transform_1, window_bounds = array<i64: 8, 4>}, {pipeline_mode = #tpu.pipeline_mode<synchronous>, transform_indices = @transform_2, window_bounds = array<i64: 8, 128>}, {pipeline_mode = #tpu.pipeline_mode<synchronous>, transform_indices = @transform_3, window_bounds = array<i64: 4, 128>}, {pipeline_mode = #tpu.pipeline_mode<synchronous>, transform_indices = @transform_4, window_bounds = array<i64: 1, 128>}, {pipeline_mode = #tpu.pipeline_mode<synchronous>, transform_indices = @transform_5, window_bounds = array<i64: 128, 128>}, {pipeline_mode = #tpu.pipeline_mode<synchronous>, transform_indices = @transform_6, window_bounds = array<i64: 1, 128>}, {pipeline_mode = #tpu.pipeline_mode<synchronous>, transform_indices = @transform_7, window_bounds = array<i64: 1, 128>}, {transform_indices = @transform_8, window_bounds = array<i64: 1, 1>}, {transform_indices = @transform_9, window_bounds = array<i64: 8, 1>}]} {
    %c0 = arith.constant 0 : index
    %c0_0 = arith.constant 0 : index
    %0 = vector.load %arg1[%c0, %c0_0] : memref<8x8xf32, #tpu.memory_space<vmem>>, vector<8x8xf32>
    %c0_1 = arith.constant 0 : index
    %c0_2 = arith.constant 0 : index
    %1 = vector.load %arg2[%c0_1, %c0_2] : memref<8x4xf32, #tpu.memory_space<vmem>>, vector<8x4xf32>
    %c0_3 = arith.constant 0 : index
    %c0_4 = arith.constant 0 : index
    %2 = vector.load %arg3[%c0_3, %c0_4] : memref<8x128xf32, #tpu.memory_space<vmem>>, vector<8x128xf32>
    %cst = arith.constant dense<0.000000e+00> : vector<8x128xf32>
    %3 = tpu.matmul %0, %2, %cst {dimension_numbers = #tpu.dot_dimension_numbers<[1], [0], [0], [1], [0, 0, 1, 1], [], []>} : vector<8x8xf32>, vector<8x128xf32>, vector<8x128xf32> -> vector<8x128xf32>
    %c0_5 = arith.constant 0 : index
    %c0_6 = arith.constant 0 : index
    %4 = vector.load %arg4[%c0_5, %c0_6] : memref<4x128xf32, #tpu.memory_space<vmem>>, vector<4x128xf32>
    %cst_7 = arith.constant dense<0.000000e+00> : vector<8x128xf32>
    %5 = tpu.matmul %1, %4, %cst_7 {dimension_numbers = #tpu.dot_dimension_numbers<[1], [0], [0], [1], [0, 0, 1, 1], [], []>} : vector<8x4xf32>, vector<4x128xf32>, vector<8x128xf32> -> vector<8x128xf32>
    %6 = arith.addf %3, %5 : vector<8x128xf32>
    %c0_8 = arith.constant 0 : index
    %c0_9 = arith.constant 0 : index
    %7 = vector.load %arg5[%c0_8, %c0_9] : memref<1x128xf32, #tpu.memory_space<vmem>>, vector<1x128xf32>
    %8 = vector.broadcast %7 : vector<1x128xf32> to vector<8x128xf32>
    %9 = arith.addf %6, %8 : vector<8x128xf32>
    %cst_10 = arith.constant 0.000000e+00 : f32
    %10 = vector.broadcast %cst_10 : f32 to vector<8x128xf32>
    %11 = arith.maximumf %9, %10 : vector<8x128xf32>
    %c0_11 = arith.constant 0 : index
    %c0_12 = arith.constant 0 : index
    %12 = vector.load %arg6[%c0_11, %c0_12] : memref<128x128xf32, #tpu.memory_space<vmem>>, vector<128x128xf32>
    %cst_13 = arith.constant dense<0.000000e+00> : vector<8x128xf32>
    %13 = tpu.matmul %11, %12, %cst_13 {dimension_numbers = #tpu.dot_dimension_numbers<[1], [0], [0], [1], [0, 0, 1, 1], [], []>} : vector<8x128xf32>, vector<128x128xf32>, vector<8x128xf32> -> vector<8x128xf32>
    %c0_14 = arith.constant 0 : index
    %c0_15 = arith.constant 0 : index
    %14 = vector.load %arg7[%c0_14, %c0_15] : memref<1x128xf32, #tpu.memory_space<vmem>>, vector<1x128xf32>
    %15 = vector.broadcast %14 : vector<1x128xf32> to vector<8x128xf32>
    %16 = arith.addf %13, %15 : vector<8x128xf32>
    %cst_16 = arith.constant 0.000000e+00 : f32
    %17 = vector.broadcast %cst_16 : f32 to vector<8x128xf32>
    %18 = arith.maximumf %16, %17 : vector<8x128xf32>
    %c0_17 = arith.constant 0 : index
    %c0_18 = arith.constant 0 : index
    %19 = vector.load %arg8[%c0_17, %c0_18] : memref<1x128xf32, #tpu.memory_space<vmem>>, vector<1x128xf32>
    %20 = vector.broadcast %19 : vector<1x128xf32> to vector<8x128xf32>
    %21 = arith.mulf %18, %20 : vector<8x128xf32>
    %cst_19 = arith.constant dense<0.000000e+00> : vector<8xf32>
    %22 = vector.multi_reduction <add>, %21, %cst_19 [1] : vector<8x128xf32> to vector<8xf32>
    %23 = vector.shape_cast %22 : vector<8xf32> to vector<8x1xf32>
    %c0_20 = arith.constant 0 : index
    %c0_21 = arith.constant 0 : index
    %24 = memref.load %arg9[%c0_20, %c0_21] : memref<1x1xf32, #tpu.memory_space<smem>>
    %25 = vector.broadcast %24 : f32 to vector<8x1xf32>
    %26 = arith.addf %23, %25 : vector<8x1xf32>
    %c0_22 = arith.constant 0 : index
    %c0_23 = arith.constant 0 : index
    %27 = vector.load %arg10[%c0_22, %c0_23] : memref<8x1xf32, #tpu.memory_space<vmem>>, vector<8x1xf32>
    tpu.vector_store %arg10[%c0_22, %c0_23], %26 {strides = array<i32>} : memref<8x1xf32, #tpu.memory_space<vmem>>, vector<8x1xf32>,
    return
  }
  func.func @transform_0(%arg0: i32) -> (i32, i32) {
    %c0_i32 = arith.constant 0 : i32
    %c0_i32_0 = arith.constant 0 : i32
    return %arg0, %c0_i32 : i32, i32
  }
  func.func @transform_1(%arg0: i32) -> (i32, i32) {
    %c0_i32 = arith.constant 0 : i32
    %c0_i32_0 = arith.constant 0 : i32
    return %arg0, %c0_i32 : i32, i32
  }
  func.func @transform_2(%arg0: i32) -> (i32, i32) {
    %c0_i32 = arith.constant 0 : i32
    %c0_i32_0 = arith.constant 0 : i32
    %c0_i32_1 = arith.constant 0 : i32
    return %c0_i32, %c0_i32_0 : i32, i32
  }
  func.func @transform_3(%arg0: i32) -> (i32, i32) {
    %c0_i32 = arith.constant 0 : i32
    %c0_i32_0 = arith.constant 0 : i32
    %c0_i32_1 = arith.constant 0 : i32
    return %c0_i32, %c0_i32_0 : i32, i32
  }
  func.func @transform_4(%arg0: i32) -> (i32, i32) {
    %c0_i32 = arith.constant 0 : i32
    %c0_i32_0 = arith.constant 0 : i32
    %c0_i32_1 = arith.constant 0 : i32
    return %c0_i32, %c0_i32_0 : i32, i32
  }
  func.func @transform_5(%arg0: i32) -> (i32, i32) {
    %c0_i32 = arith.constant 0 : i32
    %c0_i32_0 = arith.constant 0 : i32
    %c0_i32_1 = arith.constant 0 : i32
    return %c0_i32, %c0_i32_0 : i32, i32
  }
  func.func @transform_6(%arg0: i32) -> (i32, i32) {
    %c0_i32 = arith.constant 0 : i32
    %c0_i32_0 = arith.constant 0 : i32
    %c0_i32_1 = arith.constant 0 : i32
    return %c0_i32, %c0_i32_0 : i32, i32
  }
  func.func @transform_7(%arg0: i32) -> (i32, i32) {
    %c0_i32 = arith.constant 0 : i32
    %c0_i32_0 = arith.constant 0 : i32
    %c0_i32_1 = arith.constant 0 : i32
    return %c0_i32, %c0_i32_0 : i32, i32
  }
  func.func @transform_8(%arg0: i32) -> (i32, i32) {
    %c0_i32 = arith.constant 0 : i32
    %c0_i32_0 = arith.constant 0 : i32
    %c0_i32_1 = arith.constant 0 : i32
    return %c0_i32, %c0_i32_0 : i32, i32
  }
  func.func @transform_9(%arg0: i32) -> (i32, i32) {
    %c0_i32 = arith.constant 0 : i32
    %c0_i32_0 = arith.constant 0 : i32
    return %arg0, %c0_i32 : i32, i32
  }
}

</mosaic_0001>

<bundles_post_ra>
// kernel: critic_forward.1
= control target key start
LH: loop header
LB: loop body
LE: loop exit
PB: predicated region body
PF: predicated region fallthrough
CT: control target
= control target key end

     0   :  { %15 = vsyncpa [#allocation4], 0  ;;  %s330_s0 = inlined_call_operand.vmem [shape: f32[8,8], index: 0, kind: input, shape index: {}]   ;;  %s331_s1 = inlined_call_operand.vmem [shape: f32[8,4], index: 1, kind: input, shape index: {}]   ;;  %s332_s2 = inlined_call_operand.hbm [shape: f32[8,128], index: 2, kind: input, shape index: {}]   ;;  %s333_s3 = inlined_call_operand.vmem [shape: f32[4,128], index: 3, kind: input, shape index: {}]   ;;  %s334_s4 = inlined_call_operand.vmem [shape: f32[1,128], index: 4, kind: input, shape index: {}]   ;;  %s335_s5 = inlined_call_operand.hbm [shape: f32[128,128], index: 5, kind: input, shape index: {}]   ;;  %s336_s6 = inlined_call_operand.vmem [shape: f32[1,128], index: 6, kind: input, shape index: {}]   ;;  %s337_s7 = inlined_call_operand.vmem [shape: f32[1,128], index: 7, kind: input, shape index: {}]   ;;  %s338_s8 = inlined_call_operand.<no memory space> [shape: f32[1,1], index: 8, kind: input, shape index: {}]   ;;  %s339_s9 = inlined_call_operand.vmem [shape: f32[8,1], index: 9, kind: output, shape index: {}]  }
   0x1   :  { %s26_s11 = sshll.u32 %s332_s2, 4  ;;  %s27_s11 = int_to_ptr.hbm [resolvable:$true] %s26_s11 }
   0x2   :  { %16 = vsyncpa [#allocation6], 0  ;;  %s246_s12 = smov [#allocation3]   ;;  %s40_s16 = sshll.u32 %s335_s5, 4  ;;  %s41_s16 = int_to_ptr.hbm [resolvable:$true] %s40_s16 }
   0x3   :  { %s28_s13 = sshll.u32 %s246_s12, 4  ;;  %s247_s17 = smov [#allocation5]   ;;  %s29_s13 = int_to_ptr.vmem [resolvable:$true] %s28_s13 }
   0x4   :  { %31 = dma.hbm_to_vmem [thread:$0]  %s27_s11, 128, %s29_s13, [#allocation4]  }
   0x5   :  { %s42_s18 = sshll.u32 %s247_s17, 4  ;;  %s248_s19 = smov 128   ;;  %s43_s18 = int_to_ptr.vmem [resolvable:$true] %s42_s18 }
   0x6   :  { %s249_s20 = smov 8  }
   0x7   :  { %48 = dma.hbm_to_vmem [thread:$0]  %s41_s16, 2048, %s43_s18, [#allocation6], %s248_s19, %s248_s19, %s249_s20  }
   0x8   :  { %242 = dma.done.wait [#allocation4], 128  }
   0x9   :  { %243 = vsyncadd [#allocation4], 4294967168 }
   0xa   :  { %244 = dma.done.wait [#allocation6], 2048  }
   0xb   :  { %245 = vsyncadd [#allocation6], 4294965248  ;;  %vm71_vm0 = vcmask 1043456   ;;  %vm67_vm1 = vcmask 31744   ;;  %vm95_vm2 = vcmask 64512   ;;  %v65_v1 = vld [vmem:[#allocation3] sm:$0xff]  ;;  %v174_v32 = vstv %s338_s8 }
   0xc   :  { %v66_v0 = vld [vmem:[%s333_s3] sm:$0xf]  ;;  %114 = vmatpush.msra.mxu1 %v65_v1  ;;  %v139_v5 = vld [vmem:[#allocation5 + $0x70] sm:$0xff]  ;;  %v138_v6 = vld [vmem:[#allocation5 + $0x68] sm:$0xff]  ;;  %vm176_vm3 = vcmask 7168  }
   0xd   :  { %v64_v2 = vld [vmem:[%s331_s1] sm:$0xff]  ;;  %184 = vmatpush.msk.msra.mxu0 %vm71_vm0, %v66_v0  ;;  %v137_v7 = vld [vmem:[#allocation5 + $0x60] sm:$0xff]  ;;  %v135_v9 = vld [vmem:[#allocation5 + $0x50] sm:$0xff] }
   0xe   :  { %v63_v3 = vld [vmem:[%s330_s0] sm:$0xff]  ;;  %185 = vmatmul.msk.f32.vlgmr.msra.gmra.mxu0 %vm67_vm1, %v64_v2  ;;  %v134_v10 = vld [vmem:[#allocation5 + $0x48] sm:$0xff]  ;;  %v133_v11 = vld [vmem:[#allocation5 + $0x40] sm:$0xff] }
   0xf   :  { %v140_v4 = vld [vmem:[#allocation5 + $0x78] sm:$0xff]  ;;  %186 = vmatmul.msk.f32.vlgmr.msra.gmra.mxu1 %vm95_vm2, %v63_v3  ;;  %v131_v13 = vld [vmem:[#allocation5 + $0x30] sm:$0xff]  ;;  %v130_v14 = vld [vmem:[#allocation5 + $0x28] sm:$0xff] }
  0x10   :  { %145 = vmatpush.msra.mxu2 %v140_v4  ;;  %v136_v8 = vld [vmem:[#allocation5 + $0x58] sm:$0xff]  ;;  %v129_v15 = vld [vmem:[#allocation5 + $0x20] sm:$0xff]  ;;  %v127_v17 = vld [vmem:[#allocation5 + $0x10] sm:$0xff] }
  0x11   :  { %v132_v12 = vld [vmem:[#allocation5 + $0x38] sm:$0xff]  ;;  %v126_v18 = vld [vmem:[#allocation5 + $0x8] sm:$0xff]  ;;  %v125_v19 = vld [vmem:[#allocation5] sm:$0xff] }
  0x12   :  { %146 = vmatpush.msra.mxu2 %v139_v5  ;;  %v128_v16 = vld [vmem:[#allocation5 + $0x18] sm:$0xff] }
  0x13   :  { %v191_v20 = vld [vmem:[%s334_s4] ss:$0 sm:$0xff] }
  0x14   :  { %147 = vmatpush.msra.mxu2 %v138_v6  ;;  %v192_v26 = vld [vmem:[%s336_s6] ss:$0 sm:$0xff] }
  0x15   :  { %v193_v29 = vld [vmem:[%s337_s7] ss:$0 sm:$0xff] }
  0x16   :  { %148 = vmatpush.msra.mxu2 %v137_v7 }
  0x18   :  { %149 = vmatpush.msra.mxu2 %v136_v8 }
  0x1a   :  { %150 = vmatpush.msra.mxu2 %v135_v9 }
  0x1c   :  { %151 = vmatpush.msra.mxu2 %v134_v10 }
  0x1e   :  { %152 = vmatpush.msra.mxu2 %v133_v11 }
  0x20   :  { %153 = vmatpush.msra.mxu2 %v132_v12 }
  0x22   :  { %154 = vmatpush.msra.mxu2 %v131_v13 }
  0x24   :  { %155 = vmatpush.msra.mxu2 %v130_v14 }
  0x26   :  { %156 = vmatpush.msra.mxu2 %v129_v15 }
  0x28   :  { %157 = vmatpush.msra.mxu2 %v128_v16 }
  0x2a   :  { %158 = vmatpush.msra.mxu2 %v127_v17 }
  0x2c   :  { %159 = vmatpush.msra.mxu2 %v126_v18 }
  0x2e   :  { %160 = vmatpush.msra.mxu2 %v125_v19 }
  0x8b   :  { %v92_v21 = vpop.f32.mrf.mxu0 }
  0x8c   :  { %v116_v22 = vpop.f32.mrf.mxu1 }
  0x8d   :  { %v117_v23 = vadd.f32 %v116_v22, %v92_v21 }
  0x8f   :  { %v123_v24 = vadd.f32 %v191_v20, %v117_v23 }
  0x91   :  { %v124_v25 = vmax.f32 %v123_v24, 0.0 }
  0x93   :  { %161 = vmatmul.f32.vlgmr.msra.gmra.mxu2 %v124_v25 }
 0x116   :  { %v162_v27 = vpop.f32.mrf.mxu2 }
 0x117   :  { %v163_v28 = vadd.f32 %v192_v26, %v162_v27 }
 0x119   :  { %v165_v30 = vmax.f32 %v163_v28, 0.0 }
 0x11b   :  { %v170_v31 = vmul.f32 %v193_v29, %v165_v30 }
 0x11d   :  { %171 = vadd.xlane.f32.xlu0 %v170_v31 }
 0x190   :  { %v172_v33 = vpop.xlane.xlu0 %171 }
 0x191   :  { %v175_v34 = vadd.f32 %v174_v32, %v172_v33 }
 0x193   :  { %177 = vst.msk [vmem:[%s339_s9] sm:$0xff] %vm176_vm3, %v175_v34 }
 0x194   :  { %182 = vsyncpa [#allocation4], 1 }
 0x195   :  { %183 = vsyncpa [#allocation6], 1 }

</bundles_post_ra>
